<compile_context>
chip_gen: v7x
topology: tpu7x:2x2x1
jax: 0.10.0
libtpu: 0.0.40
codegen_flags: <defaults>
</compile_context>

<pallas_src>
from functools import partial

import jax
import jax.numpy as jnp
from jax.experimental import pallas as pl
from jax.experimental.pallas import tpu as pltpu


# ----------------------------------------------------------------------------
# DDPM schedules (pure JAX glue; identical math to the PyTorch helper)
# ----------------------------------------------------------------------------
def ddpm_schedules(beta1: float, beta2: float, T: int):
    assert beta1 < beta2 < 1.0, "beta1 and beta2 must be in (0, 1)"
    beta_t = (beta2 - beta1) * jnp.arange(0, T + 1, dtype=jnp.float32) / T + beta1
    sqrt_beta_t = jnp.sqrt(beta_t)
    alpha_t = 1.0 - beta_t
    log_alpha_t = jnp.log(alpha_t)
    alphabar_t = jnp.exp(jnp.cumsum(log_alpha_t, axis=0))
    sqrtab = jnp.sqrt(alphabar_t)
    oneover_sqrta = 1.0 / jnp.sqrt(alpha_t)
    sqrtmab = jnp.sqrt(1.0 - alphabar_t)
    mab_over_sqrtmab_inv = (1.0 - alpha_t) / sqrtmab
    return {
        "alpha_t": alpha_t,
        "oneover_sqrta": oneover_sqrta,
        "sqrt_beta_t": sqrt_beta_t,
        "alphabar_t": alphabar_t,
        "sqrtab": sqrtab,
        "sqrtmab": sqrtmab,
        "mab_over_sqrtmab": mab_over_sqrtmab_inv,
    }


# ----------------------------------------------------------------------------
# Pallas kernel: one batch-block of TB elements per grid step.
# Layout: pixels (H*W) on the lane axis, channels/hidden on sublanes.
# Inputs x/eps arrive bf16; elementwise math is f32; matmuls are bf16 on MXU.
# ----------------------------------------------------------------------------
def ddpm_loss_kernel(
    sa_ref, sm_ref, msk_ref,             # (TB, 1, 1) f32: sqrtab[t], sqrtmab[t], valid-mask
    x_ref, eps_ref,                      # (TB, C, HW) bf16
    temb_ref,                            # (TB, Hid, 1) f32 (b1 folded in)
    w1t_ref, w2t_ref,                    # (Hid, C) bf16, (C, Hid) bf16
    b2_ref,                              # (1, C, 1) f32
    out_ref,                             # (1, C, HW) f32 partial-sum block
    *, tb, c, hid,
):
    # upcast streaming inputs once per tile (f32 VPU elementwise everywhere)
    x = x_ref[...].astype(jnp.float32)                       # (TB, C, HW)
    e = eps_ref[...].astype(jnp.float32)                     # (TB, C, HW)

    # forward diffusion, fully vectorized over the block
    x_t = sa_ref[...] * x + sm_ref[...] * e                  # (TB, C, HW)

    # eps_model: per-pixel channel MLP with additive per-batch time embedding.
    # Batched MXU matmuls in bf16 with f32 accumulation; N dim = HW (lanes).
    w1b = jnp.broadcast_to(w1t_ref[...], (tb, hid, c))       # (TB, Hid, C) bf16
    h = jnp.einsum("bhc,bcp->bhp", w1b, x_t.astype(jnp.bfloat16),
                   preferred_element_type=jnp.float32)       # (TB, Hid, HW)
    h = jnp.maximum(h + temb_ref[...], 0.0)

    w2b = jnp.broadcast_to(w2t_ref[...], (tb, c, hid))       # (TB, C, Hid) bf16
    pred = jnp.einsum("bch,bhp->bcp", w2b, h.astype(jnp.bfloat16),
                      preferred_element_type=jnp.float32)    # (TB, C, HW)
    pred = pred + b2_ref[...]

    # masked squared error; reduce only over the batch (outer) axis — pure
    # vector adds — and emit a lane-dense (1, C, HW) partial-sum block.
    d = (e - pred) * msk_ref[...]
    out_ref[...] = jnp.sum(d * d, axis=0, keepdims=True)


# ----------------------------------------------------------------------------
# Wrapper
# ----------------------------------------------------------------------------
def ddpm_forward_loss(x_nchw, ts, eps_nchw, sqrtab, sqrtmab, params, n_T):
    B, C, H, W = x_nchw.shape
    HW = H * W
    Hid = params["w1"].shape[1]

    # --- batch-block (TB) selection: VMEM-budgeted, with enough grid steps ---
    # per-batch-element VMEM estimate: bf16 x/eps double-buffered + f32 temps.
    per_b_vmem = (2 * 2 * 2 * C * HW      # x, eps bf16, 2x double-buffered
                  + 4 * 4 * C * HW        # x_t / e / pred / d in f32
                  + 6 * Hid * HW)         # h f32 + bf16 cast
    tb = max(1, min(B, (12 * 1024 * 1024) // max(per_b_vmem, 1)))
    desired_blocks = 8 if B >= 8 else (2 if B >= 2 else 1)
    tb = max(1, min(tb, pl.cdiv(B, desired_blocks)))
    nblk = pl.cdiv(B, tb)
    Bp = nblk * tb
    pad = Bp - B

    # pixels-on-lanes layout: NCHW -> (B, C, H*W).  Pure reshape, no transpose.
    # Streaming inputs are bf16 to halve HBM traffic (kernel is HBM-bound).
    x = x_nchw.reshape(B, C, HW).astype(jnp.bfloat16)
    eps = eps_nchw.reshape(B, C, HW).astype(jnp.bfloat16)
    if pad:
        x = jnp.pad(x, ((0, pad), (0, 0), (0, 0)))
        eps = jnp.pad(eps, ((0, pad), (0, 0), (0, 0)))

    sa = jnp.pad(sqrtab[ts].astype(jnp.float32), (0, pad)).reshape(Bp, 1, 1)
    sm = jnp.pad(sqrtmab[ts].astype(jnp.float32), (0, pad)).reshape(Bp, 1, 1)
    msk = jnp.pad(jnp.ones((B,), jnp.float32), (0, pad)).reshape(Bp, 1, 1)

    # per-batch time embedding of t = _ts / n_T with b1 folded in; (Bp, Hid, 1)
    # so it broadcasts over the lane (pixel) axis in-kernel.
    t_frac = ts.astype(jnp.float32) / float(n_T)
    temb = (t_frac[:, None] * params["t_w"][None, :]
            + params["t_b"][None, :] + params["b1"])                 # (B, Hid)
    temb = jnp.pad(temb, ((0, pad), (0, 0)))[:, :, None]             # (Bp, Hid, 1)
    temb = temb.astype(jnp.float32)

    # weights transposed (out, in) so the matmul N dim = HW; bf16 MXU operands.
    w1t = params["w1"].T.astype(jnp.bfloat16)                        # (Hid, C)
    w2t = params["w2"].T.astype(jnp.bfloat16)                        # (C, Hid)
    b2 = params["b2"].reshape(1, C, 1).astype(jnp.float32)

    grid_spec = pltpu.PrefetchScalarGridSpec(
        num_scalar_prefetch=0,
        grid=(nblk,),
        in_specs=[
            pl.BlockSpec((tb, 1, 1), lambda i: (i, 0, 0)),     # sqrtab[t]
            pl.BlockSpec((tb, 1, 1), lambda i: (i, 0, 0)),     # sqrtmab[t]
            pl.BlockSpec((tb, 1, 1), lambda i: (i, 0, 0)),     # valid mask
            pl.BlockSpec((tb, C, HW), lambda i: (i, 0, 0)),    # x  (bf16)
            pl.BlockSpec((tb, C, HW), lambda i: (i, 0, 0)),    # eps (bf16)
            pl.BlockSpec((tb, Hid, 1), lambda i: (i, 0, 0)),   # temb (+b1)
            pl.BlockSpec((Hid, C), lambda i: (0, 0)),          # w1^T
            pl.BlockSpec((C, Hid), lambda i: (0, 0)),          # w2^T
            pl.BlockSpec((1, C, 1), lambda i: (0, 0, 0)),      # b2
        ],
        out_specs=pl.BlockSpec((1, C, HW), lambda i: (i, 0, 0)),
    )

    partials = pl.pallas_call(
        partial(ddpm_loss_kernel, tb=tb, c=C, hid=Hid),
        grid_spec=grid_spec,
        out_shape=jax.ShapeDtypeStruct((nblk, C, HW), jnp.float32),
        compiler_params=pltpu.CompilerParams(
            dimension_semantics=("parallel",),
            vmem_limit_bytes=32 * 1024 * 1024),
    )(sa, sm, msk, x, eps, temb, w1t, w2t, b2)

    # final cross-lane reduction + mean scaling on the host side (tiny).
    return jnp.sum(partials) / float(B * C * H * W)


# Pure-JAX f32 reference (same math) for a correctness check.
def ddpm_forward_loss_ref(x_nchw, ts, eps_nchw, sqrtab, sqrtmab, params, n_T):
    B, C, H, W = x_nchw.shape
    x = jnp.transpose(x_nchw, (0, 2, 3, 1)).reshape(B, H * W, C)
    eps = jnp.transpose(eps_nchw, (0, 2, 3, 1)).reshape(B, H * W, C)
    sa = sqrtab[ts][:, None, None]
    sm = sqrtmab[ts][:, None, None]
    x_t = sa * x + sm * eps
    t_frac = ts.astype(jnp.float32) / float(n_T)
    temb = t_frac[:, None] * params["t_w"][None, :] + params["t_b"][None, :]
    h = jnp.einsum("bpc,ch->bph", x_t, params["w1"]) + params["b1"] + temb[:, None, :]
    h = jnp.maximum(h, 0.0)
    pred = jnp.einsum("bph,hc->bpc", h, params["w2"]) + params["b2"]
    return jnp.mean((eps - pred) ** 2)


if __name__ == "__main__":
    # small shapes consistent with DDPM's forward (NCHW image input)
    B, C, H, W = 2, 4, 16, 16
    Hid = 32
    n_T = 100
    betas = (1e-4, 0.02)

    key = jax.random.PRNGKey(0)
    k_x, k_ts, k_eps, k_w1, k_w2, k_t = jax.random.split(key, 6)

    x = jax.random.normal(k_x, (B, C, H, W), dtype=jnp.float32)

    # randomness of DDPM.forward, drawn deterministically in the wrapper
    # (the kernel itself is deterministic given _ts and eps)
    ts = jax.random.randint(k_ts, (B,), 1, n_T)          # torch.randint(1, n_T)
    eps = jax.random.normal(k_eps, (B, C, H, W), dtype=jnp.float32)

    sched = ddpm_schedules(*betas, n_T)

    # deterministic synthetic eps_model parameters
    # TODO(synk): eps_model is user-supplied in the PyTorch spec; a small
    # time-conditioned channel MLP stands in for it here.
    params = {
        "w1": 0.1 * jax.random.normal(k_w1, (C, Hid), dtype=jnp.float32),
        "b1": jnp.zeros((1, Hid), dtype=jnp.float32),
        "w2": 0.1 * jax.random.normal(k_w2, (Hid, C), dtype=jnp.float32),
        "b2": jnp.zeros((1, C), dtype=jnp.float32),
        "t_w": 0.1 * jax.random.normal(k_t, (Hid,), dtype=jnp.float32),
        "t_b": jnp.zeros((Hid,), dtype=jnp.float32),
    }

    loss = ddpm_forward_loss(x, ts, eps, sched["sqrtab"], sched["sqrtmab"], params, n_T)
    loss = jax.block_until_ready(loss)

    loss_ref = ddpm_forward_loss_ref(
        x, ts, eps, sched["sqrtab"], sched["sqrtmab"], params, n_T
    )
    # bf16 streaming inputs + bf16 MXU operands vs. f32 reference -> loose tol
    assert jnp.allclose(loss, loss_ref, rtol=2e-2, atol=2e-3), (loss, loss_ref)

    print("KERNEL_OK")
</pallas_src>

<mosaic_0001>
module attributes {stable_mosaic.version = 11 : i64} {
  func.func @ddpm_loss_kernel(%arg0: i32, %arg1: memref<1x1x1xf32, #tpu.memory_space<vmem>>, %arg2: memref<1x1x1xf32, #tpu.memory_space<vmem>>, %arg3: memref<1x1x1xf32, #tpu.memory_space<vmem>>, %arg4: memref<1x4x256xbf16, #tpu.memory_space<vmem>>, %arg5: memref<1x4x256xbf16, #tpu.memory_space<vmem>>, %arg6: memref<1x32x1xf32, #tpu.memory_space<vmem>>, %arg7: memref<32x4xbf16, #tpu.memory_space<vmem>>, %arg8: memref<4x32xbf16, #tpu.memory_space<vmem>>, %arg9: memref<1x4x1xf32, #tpu.memory_space<vmem>>, %arg10: memref<1x4x256xf32, #tpu.memory_space<vmem>>) attributes {dimension_semantics = [#tpu.dimension_semantics<parallel>], iteration_bounds = array<i64: 2>, scalar_prefetch = 0 : i64, scratch_operands = 0 : i64, tpu.core_type = #tpu.core_type<tc>, window_params = [{transform_indices = @transform_0, window_bounds = array<i64: 1, 1, 1>}, {transform_indices = @transform_1, window_bounds = array<i64: 1, 1, 1>}, {transform_indices = @transform_2, window_bounds = array<i64: 1, 1, 1>}, {transform_indices = @transform_3, window_bounds = array<i64: 1, 4, 256>}, {transform_indices = @transform_4, window_bounds = array<i64: 1, 4, 256>}, {transform_indices = @transform_5, window_bounds = array<i64: 1, 32, 1>}, {pipeline_mode = #tpu.pipeline_mode<synchronous>, transform_indices = @transform_6, window_bounds = array<i64: 32, 4>}, {pipeline_mode = #tpu.pipeline_mode<synchronous>, transform_indices = @transform_7, window_bounds = array<i64: 4, 32>}, {pipeline_mode = #tpu.pipeline_mode<synchronous>, transform_indices = @transform_8, window_bounds = array<i64: 1, 4, 1>}, {transform_indices = @transform_9, window_bounds = array<i64: 1, 4, 256>}]} {
    %c0 = arith.constant 0 : index
    %c0_0 = arith.constant 0 : index
    %c0_1 = arith.constant 0 : index
    %0 = vector.load %arg4[%c0, %c0_0, %c0_1] : memref<1x4x256xbf16, #tpu.memory_space<vmem>>, vector<1x4x256xbf16>
    %1 = arith.extf %0 : vector<1x4x256xbf16> to vector<1x4x256xf32>
    %c0_2 = arith.constant 0 : index
    %c0_3 = arith.constant 0 : index
    %c0_4 = arith.constant 0 : index
    %2 = vector.load %arg5[%c0_2, %c0_3, %c0_4] : memref<1x4x256xbf16, #tpu.memory_space<vmem>>, vector<1x4x256xbf16>
    %3 = arith.extf %2 : vector<1x4x256xbf16> to vector<1x4x256xf32>
    %c0_5 = arith.constant 0 : index
    %c0_6 = arith.constant 0 : index
    %c0_7 = arith.constant 0 : index
    %4 = vector.load %arg1[%c0_5, %c0_6, %c0_7] : memref<1x1x1xf32, #tpu.memory_space<vmem>>, vector<1x1x1xf32>
    %5 = vector.broadcast %4 : vector<1x1x1xf32> to vector<1x4x256xf32>
    %6 = arith.mulf %5, %1 : vector<1x4x256xf32>
    %c0_8 = arith.constant 0 : index
    %c0_9 = arith.constant 0 : index
    %c0_10 = arith.constant 0 : index
    %7 = vector.load %arg2[%c0_8, %c0_9, %c0_10] : memref<1x1x1xf32, #tpu.memory_space<vmem>>, vector<1x1x1xf32>
    %8 = vector.broadcast %7 : vector<1x1x1xf32> to vector<1x4x256xf32>
    %9 = arith.mulf %8, %3 : vector<1x4x256xf32>
    %10 = arith.addf %6, %9 : vector<1x4x256xf32>
    %c0_11 = arith.constant 0 : index
    %c0_12 = arith.constant 0 : index
    %11 = vector.load %arg7[%c0_11, %c0_12] : memref<32x4xbf16, #tpu.memory_space<vmem>>, vector<32x4xbf16>
    %12 = vector.shape_cast %11 : vector<32x4xbf16> to vector<1x32x4xbf16>
    %13 = arith.truncf %10 : vector<1x4x256xf32> to vector<1x4x256xbf16>
    "tpu.trace_start"() <{level = 10 : i32, message = "bhc,bcp->bhp"}> : () -> ()
    %cst = arith.constant dense<0.000000e+00> : vector<1x32x256xf32>
    %14 = tpu.matmul %12, %13, %cst {dimension_numbers = #tpu.dot_dimension_numbers<[2], [1], [1], [2], [0, 0, 0, 1, 1, 2], [0], [0]>} : vector<1x32x4xbf16>, vector<1x4x256xbf16>, vector<1x32x256xf32> -> vector<1x32x256xf32>
    "tpu.trace_stop"() : () -> ()
    %c0_13 = arith.constant 0 : index
    %c0_14 = arith.constant 0 : index
    %c0_15 = arith.constant 0 : index
    %15 = vector.load %arg6[%c0_13, %c0_14, %c0_15] : memref<1x32x1xf32, #tpu.memory_space<vmem>>, vector<1x32x1xf32>
    %16 = vector.broadcast %15 : vector<1x32x1xf32> to vector<1x32x256xf32>
    %17 = arith.addf %14, %16 : vector<1x32x256xf32>
    %cst_16 = arith.constant 0.000000e+00 : f32
    %18 = vector.broadcast %cst_16 : f32 to vector<1x32x256xf32>
    %19 = arith.maximumf %17, %18 : vector<1x32x256xf32>
    %c0_17 = arith.constant 0 : index
    %c0_18 = arith.constant 0 : index
    %20 = vector.load %arg8[%c0_17, %c0_18] : memref<4x32xbf16, #tpu.memory_space<vmem>>, vector<4x32xbf16>
    %21 = vector.shape_cast %20 : vector<4x32xbf16> to vector<1x4x32xbf16>
    %22 = arith.truncf %19 : vector<1x32x256xf32> to vector<1x32x256xbf16>
    "tpu.trace_start"() <{level = 10 : i32, message = "bch,bhp->bcp"}> : () -> ()
    %cst_19 = arith.constant dense<0.000000e+00> : vector<1x4x256xf32>
    %23 = tpu.matmul %21, %22, %cst_19 {dimension_numbers = #tpu.dot_dimension_numbers<[2], [1], [1], [2], [0, 0, 0, 1, 1, 2], [0], [0]>} : vector<1x4x32xbf16>, vector<1x32x256xbf16>, vector<1x4x256xf32> -> vector<1x4x256xf32>
    "tpu.trace_stop"() : () -> ()
    %c0_20 = arith.constant 0 : index
    %c0_21 = arith.constant 0 : index
    %c0_22 = arith.constant 0 : index
    %24 = vector.load %arg9[%c0_20, %c0_21, %c0_22] : memref<1x4x1xf32, #tpu.memory_space<vmem>>, vector<1x4x1xf32>
    %25 = vector.broadcast %24 : vector<1x4x1xf32> to vector<1x4x256xf32>
    %26 = arith.addf %23, %25 : vector<1x4x256xf32>
    %27 = arith.subf %3, %26 : vector<1x4x256xf32>
    %c0_23 = arith.constant 0 : index
    %c0_24 = arith.constant 0 : index
    %c0_25 = arith.constant 0 : index
    %28 = vector.load %arg3[%c0_23, %c0_24, %c0_25] : memref<1x1x1xf32, #tpu.memory_space<vmem>>, vector<1x1x1xf32>
    %29 = vector.broadcast %28 : vector<1x1x1xf32> to vector<1x4x256xf32>
    %30 = arith.mulf %27, %29 : vector<1x4x256xf32>
    %31 = arith.mulf %30, %30 : vector<1x4x256xf32>
    %cst_26 = arith.constant dense<0.000000e+00> : vector<4x256xf32>
    %32 = vector.multi_reduction <add>, %31, %cst_26 [0] : vector<1x4x256xf32> to vector<4x256xf32>
    %33 = vector.shape_cast %32 : vector<4x256xf32> to vector<1x4x256xf32>
    %c0_27 = arith.constant 0 : index
    %c0_28 = arith.constant 0 : index
    %c0_29 = arith.constant 0 : index
    %34 = vector.load %arg10[%c0_27, %c0_28, %c0_29] : memref<1x4x256xf32, #tpu.memory_space<vmem>>, vector<1x4x256xf32>
    tpu.vector_store %arg10[%c0_27, %c0_28, %c0_29], %33 {strides = array<i32>} : memref<1x4x256xf32, #tpu.memory_space<vmem>>, vector<1x4x256xf32>,
    return
  }
  func.func @transform_0(%arg0: i32) -> (i32, i32, i32) {
    %c0_i32 = arith.constant 0 : i32
    %c0_i32_0 = arith.constant 0 : i32
    %c0_i32_1 = arith.constant 0 : i32
    return %arg0, %c0_i32, %c0_i32_0 : i32, i32, i32
  }
  func.func @transform_1(%arg0: i32) -> (i32, i32, i32) {
    %c0_i32 = arith.constant 0 : i32
    %c0_i32_0 = arith.constant 0 : i32
    %c0_i32_1 = arith.constant 0 : i32
    return %arg0, %c0_i32, %c0_i32_0 : i32, i32, i32
  }
  func.func @transform_2(%arg0: i32) -> (i32, i32, i32) {
    %c0_i32 = arith.constant 0 : i32
    %c0_i32_0 = arith.constant 0 : i32
    %c0_i32_1 = arith.constant 0 : i32
    return %arg0, %c0_i32, %c0_i32_0 : i32, i32, i32
  }
  func.func @transform_3(%arg0: i32) -> (i32, i32, i32) {
    %c0_i32 = arith.constant 0 : i32
    %c0_i32_0 = arith.constant 0 : i32
    %c0_i32_1 = arith.constant 0 : i32
    return %arg0, %c0_i32, %c0_i32_0 : i32, i32, i32
  }
  func.func @transform_4(%arg0: i32) -> (i32, i32, i32) {
    %c0_i32 = arith.constant 0 : i32
    %c0_i32_0 = arith.constant 0 : i32
    %c0_i32_1 = arith.constant 0 : i32
    return %arg0, %c0_i32, %c0_i32_0 : i32, i32, i32
  }
  func.func @transform_5(%arg0: i32) -> (i32, i32, i32) {
    %c0_i32 = arith.constant 0 : i32
    %c0_i32_0 = arith.constant 0 : i32
    %c0_i32_1 = arith.constant 0 : i32
    return %arg0, %c0_i32, %c0_i32_0 : i32, i32, i32
  }
  func.func @transform_6(%arg0: i32) -> (i32, i32) {
    %c0_i32 = arith.constant 0 : i32
    %c0_i32_0 = arith.constant 0 : i32
    %c0_i32_1 = arith.constant 0 : i32
    return %c0_i32, %c0_i32_0 : i32, i32
  }
  func.func @transform_7(%arg0: i32) -> (i32, i32) {
    %c0_i32 = arith.constant 0 : i32
    %c0_i32_0 = arith.constant 0 : i32
    %c0_i32_1 = arith.constant 0 : i32
    return %c0_i32, %c0_i32_0 : i32, i32
  }
  func.func @transform_8(%arg0: i32) -> (i32, i32, i32) {
    %c0_i32 = arith.constant 0 : i32
    %c0_i32_0 = arith.constant 0 : i32
    %c0_i32_1 = arith.constant 0 : i32
    %c0_i32_2 = arith.constant 0 : i32
    return %c0_i32, %c0_i32_0, %c0_i32_1 : i32, i32, i32
  }
  func.func @transform_9(%arg0: i32) -> (i32, i32, i32) {
    %c0_i32 = arith.constant 0 : i32
    %c0_i32_0 = arith.constant 0 : i32
    %c0_i32_1 = arith.constant 0 : i32
    return %arg0, %c0_i32, %c0_i32_0 : i32, i32, i32
  }
}

</mosaic_0001>

<bundles_post_ra>
// kernel: tpu_custom_call.1
= control target key start
LH: loop header
LB: loop body
LE: loop exit
PB: predicated region body
PF: predicated region fallthrough
CT: control target
= control target key end

     0   :  { %14 = vsyncpa [#allocation3], 0  ;;  %s1082_s0 = inlined_call_operand.vmem [shape: f32[2,1,1], index: 0, kind: input, shape index: {}]   ;;  %s1083_s1 = inlined_call_operand.vmem [shape: f32[2,1,1], index: 1, kind: input, shape index: {}]   ;;  %s1084_s2 = inlined_call_operand.vmem [shape: f32[2,1,1], index: 2, kind: input, shape index: {}]   ;;  %s1085_s3 = inlined_call_operand.vmem [shape: bf16[2,4,256], index: 3, kind: input, shape index: {}]   ;;  %s1086_s4 = inlined_call_operand.vmem [shape: bf16[2,4,256], index: 4, kind: input, shape index: {}]   ;;  %s1087_s5 = inlined_call_operand.vmem [shape: f32[2,32,1], index: 5, kind: input, shape index: {}]   ;;  %s1088_s6 = inlined_call_operand.vmem [shape: bf16[32,4], index: 6, kind: input, shape index: {}]   ;;  %s1089_s7 = inlined_call_operand.vmem [shape: bf16[4,32], index: 7, kind: input, shape index: {}]   ;;  %s1090_s8 = inlined_call_operand.vmem [shape: f32[1,4,1], index: 8, kind: input, shape index: {}]   ;;  %s1091_s9 = inlined_call_operand.hbm [shape: f32[2,4,256], index: 9, kind: output, shape index: {}]  }
   0x1   :  { %16 = vsyncpa [#allocation3 + $0x1], 0  ;;  %s948_s30 = smov 0   ;;  %s950_s10 = smov 0  }
   0x2   :  { %s952_s11 = smov 0   ;;  %s954_s12 = smov 0  }
   0x3 LB: > { %s969_s13 = sadd.s32 4294967295, %s894_s12   ;;  %s759_s14 = sadd.s32 4294967294, %s894_s12   ;;  %s894_s12 = sphi %s954_s12, %s1099_s12   ;;  %s890_s11 = sphi %s952_s11, %s1098_s11   ;;  %s886_s10 = sphi %s950_s10, %s1097_s10   ;;  %s882_s30 = sphi %s948_s30, %s1096_s30  }
   0x4   : > { %s973_s15 = sadd.s32 1, %s894_s12   ;;  %s248_s16 = sadd.s32 1, %s890_s11 }
   0x5   : > { %s245_s17 = ssub.s32 %s894_s12, %s973_s15  ;;  %p258_p0 = scmp.ne.s32.totalorder %s890_s11, %s886_s10 }
   0x6   : > { %p246_p1 = scmp.eq.s32.totalorder %s245_s17, 0  ;;  %p259_p2 = scmp.eq.s32.totalorder %s969_s13, 1 }
   0x7   : > { %p264_p3 = scmp.ne.s32.totalorder %s886_s10, %s882_s30  ;;  %p265_p4 = scmp.eq.s32.totalorder %s759_s14, 1 }
   0x8   : > { %s984_s18 = scalar_select %p246_p1, %s890_s11, %s248_s16  }
   0x9   : > { %p986_p5 = por %p259_p2, %p258_p0  ;;  %p990_p6 = por %p265_p4, %p264_p3 }
   0xa   : > { %1092 = sst [smem:[#allocation5_spill]] %s984_s18  ;;  %p762_p7 = scmp.ge.s32.totalorder %s894_s12, 1 }
   0xb   : > { %p334_p8 = scmp.lt.s32.totalorder %s894_s12, 3 }
   0xd   : > { %p335_p9 = pnand %p762_p7, %p334_p8 }
   0xe   : > { %p389_p10 = scmp.lt.s32.totalorder (!%p335_p9), %s969_s13, 1  ;;  %v896_v0 = vmov (!%p335_p9), 0   ;;  %v564_v4 = vld [vmem:[%s1090_s8] sm:$0xf] (!%p335_p9)  ;;  %vm491_vm0 = vcmask (!%p335_p9), 1041408   ;;  %vm484_vm1 = vcmask (!%p335_p9), 31744  }
   0xf   : > { %338 = sbr.rel (%p335_p9) target bundleno = 640 (0x280), region = 56  ;;  %828 = vset.pattern.permute.xlu0 (!%p335_p9), %v896_v0  ;;  %530 = vmatprep.mubr.bf16.mxu0 (!%p335_p9), %v896_v0  ;;  %v830_v22 = vld [vmem:[%s1088_s6] sm:$0xff] (!%p335_p9)   ;;  %v831_v23 = vld [vmem:[%s1088_s6 + $0x8] sm:$0xff] (!%p335_p9)   ;;  %vm570_vm2 = vcmask (!%p335_p9), 261120  }
  0x10   : > { %829 = vset.pattern.permute.xlu1 (!%p335_p9), %v896_v0  ;;  %606 = vmatprep.mubr.bf16.mxu1 (!%p335_p9), %v896_v0  ;;  %v559_v56 = vld [vmem:[%s1089_s7] sm:$0x3] (!%p335_p9) }
  0x16   : > { %s390_s21 = scalar_select %p389_p10, %s969_s13, 1 }
  0x18   : > { %s391_s24 = scalar_lea.vmem %s1082_s0, %s390_s21  ;;  %s394_s27 = scalar_lea.vmem %s1083_s1, %s390_s21 }
  0x19   : > { %v770_v1 = vld [vmem:[%s391_s24] ss:$0 sm:$0xff]  ;;  %s786_s28 = sshll.u32 %s390_s21, 5  ;;  %s397_s24 = scalar_lea.vmem %s1084_s2, %s390_s21 }
  0x1a   : > { %425 = vperm.xlu0 %828, %v770_v1   ;;  %v771_v2 = vld [vmem:[%s394_s27] ss:$0 sm:$0xff]  ;;  %s412_s16 = scalar_lea.vmem %s1087_s5, %s786_s28  ;;  %s784_s25 = sshll.u32 %s390_s21, 2 }
  0x1b   : > { %v452_v3 = vld [vmem:[%s412_s16 + $0x10] sm:$0xff]  ;;  %v450_v5 = vld [vmem:[%s412_s16] sm:$0xff]  ;;  %v451_v6 = vld [vmem:[%s412_s16 + $0x8] sm:$0xff]  ;;  %s402_s28 = scalar_lea.vmem %s1085_s3, %s784_s25  ;;  %s407_s14 = scalar_lea.vmem %s1086_s4, %s784_s25 }
  0x1c   : > { %456 = vperm.xlu1 %829, %v450_v5   ;;  %v453_v7 = vld [vmem:[%s412_s16 + $0x18] sm:$0xff]  ;;  %v778_v8 = vld [vmem:[%s397_s24] ss:$0 sm:$0xff]  ;;  %s386_s25 = sand.u32 1, %s886_s10   ;;  %s787_s27 = sshll.u32 %s969_s13, 7 }
  0x1d   : > { %v414_v9 = vld [vmem:[%s402_s28] sm:$0xf]  ;;  %s763_s26 = sshll.u32 %s386_s25, 3  ;;  %s1040_s21 = scalar_lea.hbm %s1091_s9, %s787_s27 }
  0x1e   : > { %436 = vperm.xlu0 %828, %v771_v2   ;;  %v1019_v10 = vld [vmem:[%s407_s14] sm:$0xf]  ;;  %v415_v12 = vunpack.c.l.bf16 %v414_v9  ;;  %s388_s28 = scalar_lea.vmem [#allocation2], %s763_s26  ;;  %s635_s16 = scalar_lea.sflag [#allocation3], %s386_s25 }
  0x1f   : > { %v417_v13 = vunpack.c.l.bf16 %v1019_v10  ;;  %s649_s18 = sshll.u32 %s388_s28, 4  ;;  %s897_s13 = smov [#allocation2]   ;;  %s1042_s18 = int_to_ptr.vmem [resolvable:$true] %s649_s18 }
  0x20   : > { %461 = vperm.xlu1 %829, %v451_v6   ;;  %s832_s17 = scalar_lea.vmem %s1042_s18, 128  ;;  %s836_s22 = sshll.u32 %s897_s13, 4  ;;  %s837_s22 = int_to_ptr.vmem [resolvable:$false] %s836_s22 }
  0x21   : > { %p833_p11 = scmp.ne.s32.totalorder %s1042_s18, %s832_s17  ;;  %s838_s23 = scalar_lea.vmem %s837_s22, 256 }
  0x22   : > { %466 = vperm.xlu0 %828, %v452_v3   ;;  %p839_p0 = scmp.lt.s32.totalorder %s1042_s18, %s837_s22  ;;  %p840_p1 = scmp.lt.s32.totalorder %s838_s23, %s832_s17 }
  0x23   : > { %p834_p12 = pnand %p833_p11, %p986_p5 }
  0x24   : > { %471 = vperm.xlu1 %829, %v453_v7   ;;  %p841_p2 = por %p840_p1, %p839_p0 }
  0x25   : > { %p835_p13 = pneg %p834_p12 }
  0x26   : > { %567 = vperm.xlu0 %828, %v564_v4  }
  0x27   : > { %p842_p3 = pnand %p841_p2, %p835_p13 }
  0x28   : > { %627 = vperm.xlu1 %829, %v778_v8  }
  0x99   : > { %v426_v11 = vpop.permute.xlu0 %425 }
  0x9a   : > { %v428_v15 = vmul.f32 %v426_v11, %v415_v12 }
  0x9b   : > { %v457_v24 = vpop.permute.xlu1 %456 }
  0x9d   : > { %v437_v14 = vpop.permute.xlu0 %436 }
  0x9e   : > { %v439_v16 = vmul.f32 %v437_v14, %v417_v13 }
  0x9f   : > { %v462_v28 = vpop.permute.xlu1 %461 }
  0xa0   : > { %v440_v17 = vadd.f32 %v439_v16, %v428_v15 }
  0xa1   : > { %v467_v39 = vpop.permute.xlu0 %466 }
  0xa2   : > { %v446_v18 = vcombine.high %v440_v17, %v440_v17  ;;  %v448_v19 = vpack.c.bf16 %v440_v17, %v440_v17 }
  0xa3   : > { %v472_v44 = vpop.permute.xlu1 %471 }
  0xa4   : > { %v449_v20 = vpack.c.bf16 %v446_v18, %v446_v18  ;;  %v493_v21 = vsel %vm491_vm0, %v448_v19, 0 }
  0xa5   : > { %v568_v57 = vpop.permute.xlu0 %567 }
  0xa6   : > { %774 = vmatprep.subr.msk.bf16.mxu0 %vm491_vm0, %v449_v20 }
  0xa7   : > { %499 = vmatpush1.bf16.msra.mxu0 %v493_v21  ;;  %v628_v2 = vpop.permute.xlu1 %627 }
  0xaa   : > { %775 = vmatmul.mubr.msk.bf16.vlgmr.msra.gmra.mrb[0].mxu0 %vm484_vm1, %v830_v22 }
  0xab   : > { %540 = vmatprep.mubr.bf16.mxu0 %v896_v0 }
  0xb2   : > { %776 = vmatmul.mubr.msk.bf16.gmra.mrb[4].mxu0 %vm484_vm1, %v831_v23 }
 0x17d   : > { %v532_v25 = vpop.f32.mrb[0].mxu0 }
 0x17e   : > { %v533_v26 = vadd.f32 %v532_v25, %v457_v24  ;;  %v534_v27 = vpop.f32.mrb[1].mxu0 }
 0x17f   : > { %v535_v29 = vadd.f32 %v534_v27, %v457_v24  ;;  %v536_v30 = vpop.f32.mrb[2].mxu0 }
 0x180   : > { %v537_v31 = vadd.f32 %v536_v30, %v462_v28  ;;  %v538_v32 = vpop.f32.mrb[3].mxu0  ;;  %v551_v34 = vmax.f32 %v533_v26, 0.0 }
 0x181   : > { %v539_v33 = vadd.f32 %v538_v32, %v462_v28  ;;  %v552_v36 = vmax.f32 %v535_v29, 0.0 }
 0x182   : > { %v553_v35 = vmax.f32 %v537_v31, 0.0 }
 0x183   : > { %v554_v37 = vmax.f32 %v539_v33, 0.0 }
 0x184   : > { %v560_v38 = vpack.c.bf16 %v553_v35, %v551_v34 }
 0x185   : > { %v542_v40 = vpop.f32.mrb[4].mxu0  ;;  %v561_v41 = vpack.c.bf16 %v554_v37, %v552_v36 }
 0x186   : > { %v543_v42 = vadd.f32 %v542_v40, %v467_v39  ;;  %v544_v43 = vpop.f32.mrb[5].mxu0 }
 0x187   : > { %v545_v45 = vadd.f32 %v544_v43, %v467_v39  ;;  %v546_v46 = vpop.f32.mrb[6].mxu0  ;;  %574 = vmatprep.subr.bf16.mxu1 %v561_v41 }
 0x188   : > { %v547_v47 = vadd.f32 %v546_v46, %v472_v44  ;;  %v548_v48 = vpop.f32.mrb[7].mxu0  ;;  %575 = vmatpush1.bf16.msra.mxu1 %v560_v38  ;;  %v555_v50 = vmax.f32 %v543_v42, 0.0 }
 0x189   : > { %v549_v49 = vadd.f32 %v548_v48, %v472_v44  ;;  %v556_v52 = vmax.f32 %v545_v45, 0.0 }
 0x18a   : > { %v557_v51 = vmax.f32 %v547_v47, 0.0 }
 0x18b   : > { %v558_v53 = vmax.f32 %v549_v49, 0.0 }
 0x18c   : > { %v562_v54 = vpack.c.bf16 %v557_v51, %v555_v50 }
 0x18d   : > { %v563_v55 = vpack.c.bf16 %v558_v53, %v556_v52 }
 0x18f   : > { %576 = vmatprep.subr.bf16.mxu1 %v563_v55 }
 0x190   : > { %577 = vmatpush1.bf16.msra.mxu1 %v562_v54 }
 0x193   : > { %777 = vmatmul.mubr.msk.bf16.vlgmr.msra.gmra.mrb[0].mxu1 %vm570_vm2, %v559_v56 }
 0x266   : > { %v608_v58 = vpop.f32.mrb[0].mxu1 }
 0x267   : > { %v609_v59 = vadd.f32 %v608_v58, %v568_v57  ;;  %v610_v60 = vpop.f32.mrb[1].mxu1 }
 0x268   : > { %v611_v61 = vadd.f32 %v610_v60, %v568_v57  ;;  %v612_v62 = vpop.f32.mrb[2].mxu1 }
 0x269   : > { %v613_v63 = vpop.f32.mrb[3].mxu1 }
 0x26a   : > { %v617_v0 = vcombine.low %v609_v59, %v611_v61 }
 0x26c   : > { %v619_v1 = vsub.f32 %v417_v13, %v617_v0 }
 0x26e   : > { %v630_v3 = vmul.f32 %v628_v2, %v619_v1 }
 0x270   : > { %v631_v4 = vmul.f32 %v630_v3, %v630_v3 }
 0x272   : > { %633 = vst [vmem:[%s388_s28] sm:$0xff] %v631_v4 }
 0x273   : > { %845 = shalt.err (!%p842_p3)
}
 0x274   : > { %s846_s24 = scalar_lea.hbm %s1040_s21, 128  ;;  %s850_s27 = scalar_lea.hbm %s1091_s9, 256 }
 0x275   : > { %p847_p4 = scmp.ne.s32.totalorder %s1040_s21, %s846_s24  ;;  %p851_p9 = scmp.lt.u32.totalorder %s1040_s21, %s1091_s9 }
 0x276   : > { %p852_p10 = scmp.lt.u32.totalorder %s850_s27, %s846_s24  ;;  %p854_p12 = scmp.lt.u32.totalorder %s846_s24, %s1040_s21 }
 0x277   : > { %p848_p7 = pnand %p847_p4, %p986_p5 }
 0x278   : > { %p853_p11 = por %p852_p10, %p851_p9 }
 0x279   : > { %p849_p8 = pneg %p848_p7 }
 0x27a   : > { %p855_p13 = por %p854_p12, %p853_p11 }
 0x27c   : > { %p856_p0 = pnand %p855_p13, %p849_p8 }
 0x27e   : > { %859 = shalt.err (!%p856_p0)
}
 0x27f   : > { %788 = dma.vmem_to_hbm [thread:$0]  (%p986_p5), %s1042_s18, 128, %s1040_s21, %s635_s16  }
 0x280 PF: > { %p794_p1 = scmp.ge.s32.totalorder %s894_s12, 2  ;;  %s661_s14 = sand.u32 1, %s882_s30  }
 0x281   : > { %s662_s17 = scalar_lea.sflag [#allocation3], %s661_s14 }
 0x282   : > { %p791_p2 = pnand %p794_p1, %p990_p6 }
 0x284   : > { %877 = dma.done.wait (!%p791_p2), %s662_s17, 128  }
 0x285   : > { %879 = vsyncadd (!%p791_p2), %s662_s17, 4294967168  ;;  %s1095_s13 = sld [smem:[#allocation5_spill]]  ;;  %p19_p3 = scmp.ge.s32.totalorder %s973_s15, 4  }
 0x286   : > { %s1096_s30 = smov %s886_s10  ;;  %s1097_s10 = smov %s890_s11 }
 0x287   : > { %s1099_s12 = smov %s973_s15  ;;  %21 = sbr.rel (!%p19_p3) target bundleno = 3 (0x3), region = 106 }
 0x28b   : > { %s1098_s11 = smov %s1095_s13 }
 0x28e   :  { %667 = vsyncpa [#allocation3], 1 }
 0x28f   :  { %669 = vsyncpa [#allocation3 + $0x1], 1 }

</bundles_post_ra>
